<compile_context>
chip_gen: v5e
topology: v5e:2x2
jax: 0.10.0
libtpu: 0.0.40
codegen_flags: <defaults>
</compile_context>

<pallas_src>
import functools

import jax
import jax.numpy as jnp
from jax import lax
from jax.experimental import pallas as pl
from jax.experimental.pallas import tpu as pltpu


def _round_up(a, b):
    return -(-a // b) * b


def reverb_kernel(x_ref, noise_ref, decay_ref, wet_ref, o_ref, *, l_ctx, c500):
    """One M-block of overlap-save windows against the banded impulse Toeplitz.

    x_ref:     (MB, K_win)  bf16  overlapping signal windows (time folded into M)
    noise_ref: (K_win, TN)  f32   noise[lag] band, pre-masked to lag in [1, length)
    decay_ref: (1,)         f32   SMEM scalar
    wet_ref:   (1,)         f32   SMEM scalar
    o_ref:     (MB, TN)     f32
    """
    k_win, tn = noise_ref.shape

    # Small iotas, reused for the unit tap and the separable envelope.
    row_i = lax.broadcasted_iota(jnp.int32, (k_win, 1), 0)
    col_i = lax.broadcasted_iota(jnp.int32, (1, tn), 1)

    # Scalar params -> tiny vectors: O(K_win + TN) transcendentals, not O(T^2).
    neg_decay = -decay_ref[0]
    wet = wet_ref[0]

    def softplus(v):                                  # numerically stable softplus
        return jnp.maximum(v, 0.0) + jnp.log1p(jnp.exp(-jnp.abs(v)))

    sp_r = softplus(jnp.broadcast_to(neg_decay, (k_win, 1)))
    sp_c = softplus(jnp.broadcast_to(neg_decay, (1, tn)))
    wet_gain = 1.0 / (1.0 + jnp.exp(jnp.broadcast_to(-wet, (1, tn))))

    # env(lag) = exp(-softplus(-decay) * (lag / sr) * 500), lag = l_ctx + col - row,
    # as a separable outer product exp(sp*c*row) * exp(-sp*c*(l_ctx+col)).
    # Out-of-band positions carry noise == 0, so their (finite) envelope values
    # are annihilated; factors stay finite for the module's parameter regime
    # (decay >= 0 => softplus(-decay) <= log 2).
    row_f = row_i.astype(jnp.float32)
    col_f = col_i.astype(jnp.float32)
    r = jnp.exp(sp_r * (c500 * row_f))                          # (K_win, 1)
    q = jnp.exp(-sp_c * (c500 * (col_f + l_ctx))) * wet_gain    # (1, TN)

    # noise band is pre-masked to lag in [1, length); unit tap added at lag == 0.
    unit = (row_i == (col_i + l_ctx)).astype(jnp.float32)       # (K_win, TN)
    imp = noise_ref[...] * (r * q) + unit

    # bf16 operands / f32 accumulation on the MXU.
    o_ref[...] = jnp.dot(x_ref[...], imp.astype(jnp.bfloat16),
                         preferred_element_type=jnp.float32)


def _pick_mb(m_total, k_win, tn, vmem_budget=24 * 1024 * 1024):
    """Largest M-block whose double-buffered VMEM footprint fits the budget."""
    mb_cap = 8
    for mb in (8, 16, 32, 64, 128, 256, 512, 1024):
        vmem = (2 * mb * k_win * 2          # x windows, bf16, 2 buffers
                + 2 * k_win * tn * 4        # noise band, f32
                + 2 * mb * tn * 4)          # output tile, f32
        if vmem <= vmem_budget:
            mb_cap = mb
    return min(mb_cap, max(8, _round_up(m_total, 8)))


def reverb_forward(x, noise, decay, wet, *, length, sampling_rate):
    """x: (B, T, 1) float; noise: (length, 1); decay, wet: scalars."""
    B, T, _ = x.shape
    x2d = x[..., 0].astype(jnp.float32)

    # --- static tiling decisions -------------------------------------------
    TN = 256 if (T % 256 == 0) else 128          # output time tile (lane dim)
    T_pad = _round_up(T, TN)
    L_ctx = _round_up(max(length - 1, 1), 128)   # left context, >= length-1 taps
    K_win = TN + L_ctx
    n_blocks = T_pad // TN
    M_total = B * n_blocks
    MB = _pick_mb(M_total, K_win, TN)
    grid_m = -(-M_total // MB)
    M_pad = grid_m * MB

    # --- glue: layout only (no forward arithmetic) -------------------------
    # Overlap-save windows: row (b, w) holds x[b, w*TN - L_ctx : w*TN + TN].
    # Fed to the kernel in bf16 (it is the bf16 matmul operand anyway) to halve
    # the dominant HBM read.
    x_sig = jnp.pad(x2d, ((0, 0), (L_ctx, T_pad - T)))
    win_idx = (jnp.arange(n_blocks) * TN)[:, None] + jnp.arange(K_win)[None, :]
    x_win = x_sig[:, win_idx].reshape(M_total, K_win)
    x_win = jnp.pad(x_win, ((0, M_pad - M_total), (0, 0))).astype(jnp.bfloat16)

    # Small banded noise Toeplitz (K_win, TN): noise[lag] for lag in [1, length),
    # zero elsewhere. Size is independent of T and it is DMA'd once (constant
    # index_map, resident across the grid).
    noise1d = noise[:, 0].astype(jnp.float32)
    lag_m = L_ctx + jnp.arange(TN)[None, :] - jnp.arange(K_win)[:, None]
    in_band = (lag_m >= 1) & (lag_m < length)
    noise_toe = jnp.where(in_band, noise1d[jnp.clip(lag_m, 0, length - 1)], 0.0)

    decay_arr = jnp.asarray(decay, jnp.float32).reshape(1)
    wet_arr = jnp.asarray(wet, jnp.float32).reshape(1)

    kernel = functools.partial(reverb_kernel, l_ctx=L_ctx,
                               c500=500.0 / float(sampling_rate))

    out_win = pl.pallas_call(
        kernel,
        out_shape=jax.ShapeDtypeStruct((M_pad, TN), jnp.float32),
        grid=(grid_m,),
        in_specs=[
            pl.BlockSpec((MB, K_win), lambda m: (m, 0)),        # signal windows
            pl.BlockSpec((K_win, TN), lambda m: (0, 0)),        # noise band (resident)
            pl.BlockSpec(memory_space=pltpu.MemorySpace.SMEM),  # decay scalar
            pl.BlockSpec(memory_space=pltpu.MemorySpace.SMEM),  # wet scalar
        ],
        out_specs=pl.BlockSpec((MB, TN), lambda m: (m, 0)),
        compiler_params=pltpu.CompilerParams(
            dimension_semantics=("parallel",),       # shards M-blocks across v7x TCs
            vmem_limit_bytes=32 * 1024 * 1024,
        ),
    )(x_win, noise_toe, decay_arr, wet_arr)

    out2d = out_win[:M_total].reshape(B, n_blocks * TN)[:, :T]
    return out2d[..., None]


def reverb_reference(x, noise, decay, wet, *, length, sampling_rate):
    """Plain-JAX mirror of the PyTorch module (build_impulse + fft_convolve)."""
    lenx = x.shape[1]
    t = (jnp.arange(length, dtype=jnp.float32) / sampling_rate).reshape(1, -1, 1)
    tenv = jnp.exp(-jax.nn.softplus(-decay) * t * 500.0)
    impulse = noise[None] * tenv * jax.nn.sigmoid(wet)
    impulse = impulse.at[:, 0].set(1.0)
    impulse = jnp.pad(impulse, ((0, 0), (0, lenx - length), (0, 0)))
    sig = x[..., 0]
    ker = impulse[..., 0]
    sig = jnp.pad(sig, ((0, 0), (0, sig.shape[-1])))
    ker = jnp.pad(ker, ((0, 0), (ker.shape[-1], 0)))
    out = jnp.fft.irfft(jnp.fft.rfft(sig) * jnp.fft.rfft(ker))
    out = out[..., out.shape[-1] // 2:]
    return out[..., None]


if __name__ == "__main__":
    length = 32          # reverb IR length (module __init__ arg)
    sampling_rate = 16000
    B, lenx = 4, 128     # audio: batch 4, 128 samples

    key = jax.random.PRNGKey(0)
    k_noise, k_x = jax.random.split(key)
    # Parameters as in __init__: noise ~ U(-1, 1) of shape (length, 1),
    # decay = 5.0, wet = 0.0 (deterministic in-script init; no checkpoint).
    noise = jax.random.uniform(k_noise, (length, 1), jnp.float32, -1.0, 1.0)
    decay = jnp.float32(5.0)
    wet = jnp.float32(0.0)
    x = jax.random.normal(k_x, (B, lenx, 1), dtype=jnp.float32)

    out = reverb_forward(x, noise, decay, wet, length=length,
                         sampling_rate=sampling_rate)
    out = jax.block_until_ready(out)

    ref = reverb_reference(x, noise, decay, wet, length=length,
                           sampling_rate=sampling_rate)
    assert out.shape == x.shape == (B, lenx, 1)
    max_err = float(jnp.max(jnp.abs(out - ref)))
    # Tolerance accounts for bf16 matmul operands (f32 accumulation).
    assert jnp.allclose(out, ref, atol=5e-2, rtol=5e-2), max_err
    print("KERNEL_OK")
</pallas_src>

<mosaic_0001>
module attributes {stable_mosaic.version = 11 : i64} {
  func.func @reverb_kernel(%arg0: i32, %arg1: memref<8x256xbf16, #tpu.memory_space<vmem>>, %arg2: memref<256x128xf32, #tpu.memory_space<vmem>>, %arg3: memref<1xf32, #tpu.memory_space<smem>>, %arg4: memref<1xf32, #tpu.memory_space<smem>>, %arg5: memref<8x128xf32, #tpu.memory_space<vmem>>) attributes {dimension_semantics = [#tpu.dimension_semantics<parallel>], iteration_bounds = array<i64: 1>, scalar_prefetch = 0 : i64, scratch_operands = 0 : i64, tpu.core_type = #tpu.core_type<tc>, window_params = [{transform_indices = @transform_0, window_bounds = array<i64: 8, 256>}, {pipeline_mode = #tpu.pipeline_mode<synchronous>, transform_indices = @transform_1, window_bounds = array<i64: 256, 128>}, {transform_indices = @transform_2, window_bounds = array<i64: 1>}, {transform_indices = @transform_3, window_bounds = array<i64: 1>}, {transform_indices = @transform_4, window_bounds = array<i64: 8, 128>}]} {
    %0 = tpu.iota {dimensions = array<i32: 0>} : vector<256x1xi32>
    %1 = tpu.iota {dimensions = array<i32: 1>} : vector<1x128xi32>
    %c0 = arith.constant 0 : index
    %2 = memref.load %arg3[%c0] : memref<1xf32, #tpu.memory_space<smem>>
    %cst = arith.constant 0.000000e+00 : f32
    %3 = arith.subf %cst, %2 : f32
    %c0_0 = arith.constant 0 : index
    %4 = memref.load %arg4[%c0_0] : memref<1xf32, #tpu.memory_space<smem>>
    %5 = vector.broadcast %3 : f32 to vector<256x1xf32>
    %cst_1 = arith.constant 0.000000e+00 : f32
    %6 = vector.broadcast %cst_1 : f32 to vector<256x1xf32>
    %7 = arith.maximumf %5, %6 : vector<256x1xf32>
    %8 = math.absf %5 : vector<256x1xf32>
    %cst_2 = arith.constant 0.000000e+00 : f32
    %9 = vector.broadcast %cst_2 : f32 to vector<256x1xf32>
    %10 = arith.subf %9, %8 : vector<256x1xf32>
    %11 = math.exp %10 : vector<256x1xf32>
    %12 = math.log1p %11 : vector<256x1xf32>
    %13 = arith.addf %7, %12 : vector<256x1xf32>
    %14 = vector.broadcast %3 : f32 to vector<1x128xf32>
    %cst_3 = arith.constant 0.000000e+00 : f32
    %15 = vector.broadcast %cst_3 : f32 to vector<1x128xf32>
    %16 = arith.maximumf %14, %15 : vector<1x128xf32>
    %17 = math.absf %14 : vector<1x128xf32>
    %cst_4 = arith.constant 0.000000e+00 : f32
    %18 = vector.broadcast %cst_4 : f32 to vector<1x128xf32>
    %19 = arith.subf %18, %17 : vector<1x128xf32>
    %20 = math.exp %19 : vector<1x128xf32>
    %21 = math.log1p %20 : vector<1x128xf32>
    %22 = arith.addf %16, %21 : vector<1x128xf32>
    %cst_5 = arith.constant 0.000000e+00 : f32
    %23 = arith.subf %cst_5, %4 : f32
    %24 = vector.broadcast %23 : f32 to vector<1x128xf32>
    %25 = math.exp %24 : vector<1x128xf32>
    %cst_6 = arith.constant 1.000000e+00 : f32
    %26 = vector.broadcast %cst_6 : f32 to vector<1x128xf32>
    %27 = arith.addf %26, %25 : vector<1x128xf32>
    %cst_7 = arith.constant 1.000000e+00 : f32
    %28 = vector.broadcast %cst_7 : f32 to vector<1x128xf32>
    %29 = arith.divf %28, %27 : vector<1x128xf32>
    %30 = arith.sitofp %0 : vector<256x1xi32> to vector<256x1xf32>
    %31 = arith.sitofp %1 : vector<1x128xi32> to vector<1x128xf32>
    %cst_8 = arith.constant 3.125000e-02 : f32
    %32 = vector.broadcast %cst_8 : f32 to vector<256x1xf32>
    %33 = arith.mulf %32, %30 : vector<256x1xf32>
    %34 = arith.mulf %13, %33 : vector<256x1xf32>
    %35 = math.exp %34 : vector<256x1xf32>
    %cst_9 = arith.constant 0.000000e+00 : f32
    %36 = vector.broadcast %cst_9 : f32 to vector<1x128xf32>
    %37 = arith.subf %36, %22 : vector<1x128xf32>
    %cst_10 = arith.constant 1.280000e+02 : f32
    %38 = vector.broadcast %cst_10 : f32 to vector<1x128xf32>
    %39 = arith.addf %31, %38 : vector<1x128xf32>
    %cst_11 = arith.constant 3.125000e-02 : f32
    %40 = vector.broadcast %cst_11 : f32 to vector<1x128xf32>
    %41 = arith.mulf %40, %39 : vector<1x128xf32>
    %42 = arith.mulf %37, %41 : vector<1x128xf32>
    %43 = math.exp %42 : vector<1x128xf32>
    %44 = arith.mulf %43, %29 : vector<1x128xf32>
    %c128_i32 = arith.constant 128 : i32
    %45 = vector.broadcast %c128_i32 : i32 to vector<1x128xi32>
    %46 = arith.addi %1, %45 : vector<1x128xi32>
    %47 = vector.broadcast %0 : vector<256x1xi32> to vector<256x128xi32>
    %48 = vector.broadcast %46 : vector<1x128xi32> to vector<256x128xi32>
    %49 = arith.cmpi eq, %47, %48 : vector<256x128xi32>
    %50 = arith.extui %49 : vector<256x128xi1> to vector<256x128xi32>
    %51 = arith.sitofp %50 : vector<256x128xi32> to vector<256x128xf32>
    %c0_12 = arith.constant 0 : index
    %c0_13 = arith.constant 0 : index
    %52 = vector.load %arg2[%c0_12, %c0_13] : memref<256x128xf32, #tpu.memory_space<vmem>>, vector<256x128xf32>
    %53 = vector.broadcast %35 : vector<256x1xf32> to vector<256x128xf32>
    %54 = vector.broadcast %44 : vector<1x128xf32> to vector<256x128xf32>
    %55 = arith.mulf %53, %54 : vector<256x128xf32>
    %56 = arith.mulf %52, %55 : vector<256x128xf32>
    %57 = arith.addf %56, %51 : vector<256x128xf32>
    %c0_14 = arith.constant 0 : index
    %c0_15 = arith.constant 0 : index
    %58 = vector.load %arg1[%c0_14, %c0_15] : memref<8x256xbf16, #tpu.memory_space<vmem>>, vector<8x256xbf16>
    %59 = arith.truncf %57 : vector<256x128xf32> to vector<256x128xbf16>
    %cst_16 = arith.constant dense<0.000000e+00> : vector<8x128xf32>
    %60 = tpu.matmul %58, %59, %cst_16 {dimension_numbers = #tpu.dot_dimension_numbers<[1], [0], [0], [1], [0, 0, 1, 1], [], []>} : vector<8x256xbf16>, vector<256x128xbf16>, vector<8x128xf32> -> vector<8x128xf32>
    %c0_17 = arith.constant 0 : index
    %c0_18 = arith.constant 0 : index
    %61 = vector.load %arg5[%c0_17, %c0_18] : memref<8x128xf32, #tpu.memory_space<vmem>>, vector<8x128xf32>
    tpu.vector_store %arg5[%c0_17, %c0_18], %60 {strides = array<i32>} : memref<8x128xf32, #tpu.memory_space<vmem>>, vector<8x128xf32>,
    return
  }
  func.func @transform_0(%arg0: i32) -> (i32, i32) {
    %c0_i32 = arith.constant 0 : i32
    %c0_i32_0 = arith.constant 0 : i32
    return %arg0, %c0_i32 : i32, i32
  }
  func.func @transform_1(%arg0: i32) -> (i32, i32) {
    %c0_i32 = arith.constant 0 : i32
    %c0_i32_0 = arith.constant 0 : i32
    %c0_i32_1 = arith.constant 0 : i32
    return %c0_i32, %c0_i32_0 : i32, i32
  }
  func.func @transform_2(%arg0: i32) -> i32 {
    %c0_i32 = arith.constant 0 : i32
    %c0_i32_0 = arith.constant 0 : i32
    return %c0_i32 : i32
  }
  func.func @transform_3(%arg0: i32) -> i32 {
    %c0_i32 = arith.constant 0 : i32
    %c0_i32_0 = arith.constant 0 : i32
    return %c0_i32 : i32
  }
  func.func @transform_4(%arg0: i32) -> (i32, i32) {
    %c0_i32 = arith.constant 0 : i32
    %c0_i32_0 = arith.constant 0 : i32
    return %arg0, %c0_i32 : i32, i32
  }
}

</mosaic_0001>

<bundles_post_ra>
// kernel: tpu_custom_call.1
= control target key start
LH: loop header
LB: loop body
LE: loop exit
PB: predicated region body
PF: predicated region fallthrough
CT: control target
= control target key end

     0   :  { %11 = vsyncpa [#allocation5], 0  ;;  %s1127_s0 = inlined_call_operand.hbm [shape: bf16[8,256], index: 0, kind: input, shape index: {}]   ;;  %s1128_s1 = inlined_call_operand.hbm [shape: f32[256,128], index: 1, kind: input, shape index: {}]   ;;  %s1129_s2 = inlined_call_operand.<no memory space> [shape: f32[1], index: 2, kind: input, shape index: {}]   ;;  %s1130_s3 = inlined_call_operand.<no memory space> [shape: f32[1], index: 3, kind: input, shape index: {}]   ;;  %s1131_s4 = inlined_call_operand.hbm [shape: f32[8,128], index: 4, kind: output, shape index: {}]  }
   0x1   :  { %12 = vsyncpa [#allocation8], 0 }
   0x2   :  { %13 = vsyncpa [#allocation6], 0  ;;  %s19_s17 = sshll.u32 %s1127_s0, 4  ;;  %s760_s18 = smov [#allocation4]   ;;  %s20_s17 = int_to_ptr.hbm [resolvable:$true] %s19_s17 }
   0x3   :  { %s21_s19 = sshll.u32 %s760_s18, 4  ;;  %s29_s22 = sshll.u32 %s1128_s1, 4  ;;  %s22_s19 = int_to_ptr.vmem [resolvable:$true] %s21_s19  ;;  %s30_s22 = int_to_ptr.hbm [resolvable:$true] %s29_s22 }
   0x4   :  { %24 = dma.hbm_to_vmem [thread:$0]  %s20_s17, 128, %s22_s19, [#allocation5]  }
   0x5   :  { %s761_s23 = smov [#allocation7]   ;;  %s762_s25 = smov 128  }
   0x6   :  { %s31_s24 = sshll.u32 %s761_s23, 4  ;;  %s763_s26 = smov 8   ;;  %s32_s24 = int_to_ptr.vmem [resolvable:$true] %s31_s24 }
   0x7   :  { %37 = dma.hbm_to_vmem [thread:$0]  %s30_s22, 4096, %s32_s24, [#allocation8], %s762_s25, %s762_s25, %s763_s26  }
   0x8   :  { %754 = dma.done.wait [#allocation5], 128  }
   0x9   :  { %755 = vsyncadd [#allocation5], 4294967168 }
   0xa   :  { %756 = dma.done.wait [#allocation8], 4096  }
   0xb   :  { %757 = vsyncadd [#allocation8], 4294963200  ;;  %v50_v0 = vlaneseq  ;;  %s86_s28 = ssub.f32 0.0, %s1129_s2  ;;  %v764_v60 = vmov 0.0   ;;  %s765_s2 = smov [#allocation9]  }
   0xc   :  { %s104_s1 = ssub.f32 0.0, %s1130_s3  ;;  %s573_s3 = sshll.u32 %s765_s2, 4  ;;  %s574_s3 = int_to_ptr.vmem [resolvable:$true] %s573_s3 }
   0xd   :  { %v803_v1 = vshrl.u32 %v50_v0, 7  ;;  %v84_v2 = vand.u32 127, %v50_v0  ;;  %v805_v3 = vstv %s86_s28  ;;  %s575_s7 = sshll.u32 %s1131_s4, 4  ;;  %s576_s7 = int_to_ptr.hbm [resolvable:$true] %s575_s7 }
   0xe   :  { %v90_v4 = vand.u32 2147483647, %v805_v3  ;;  %v105_v5 = vstv %s104_s1  ;;  %v89_v21 = vmax.f32 %v805_v3, 0.0 }
   0xf   :  { %v65_v6 = vadd.s32 112, %v803_v1  ;;  %v66_v7 = vadd.s32 120, %v803_v1  ;;  %v106_v8 = vmul.f32 1.442695, %v105_v5  ;;  %v156_v9 = vcvt.s32.f32 %v84_v2 }
  0x10   :  { %v91_v10 = vsub.f32 0.0, %v90_v4  ;;  %v81_v11 = vadd.s32 240, %v803_v1  ;;  %v82_v12 = vadd.s32 248, %v803_v1  ;;  %v63_v13 = vadd.s32 96, %v803_v1 }
  0x11   :  { %608 = vpow2.f32 %v106_v8  ;;  %v138_v14 = vcvt.s32.f32 %v65_v6  ;;  %v139_v16 = vcvt.s32.f32 %v66_v7  ;;  %v286_v17 = vadd.f32 128.0, %v156_v9 }
  0x12   :  { %v92_v15 = vmul.f32 1.442695, %v91_v10  ;;  %v64_v18 = vadd.s32 104, %v803_v1  ;;  %v154_v19 = vcvt.s32.f32 %v81_v11  ;;  %v155_v20 = vcvt.s32.f32 %v82_v12 }
  0x13   :  { %v815_v22 = vmul.f32 0.03125, %v138_v14  ;;  %v136_v23 = vcvt.s32.f32 %v63_v13  ;;  %v79_v25 = vadd.s32 224, %v803_v1  ;;  %v80_v26 = vadd.s32 232, %v803_v1 }
  0x14   :  { %610 = vpow2.f32 %v92_v15  ;;  %v137_v24 = vcvt.s32.f32 %v64_v18  ;;  %v61_v27 = vadd.s32 80, %v803_v1  ;;  %v820_v28 = vmul.f32 0.03125, %v139_v16 }
  0x15   :  { %v822_v29 = vmul.f32 0.03125, %v286_v17  ;;  %v62_v30 = vadd.s32 88, %v803_v1  ;;  %v826_v31 = vadd.s32 208, %v803_v1  ;;  %v828_v33 = vmul.f32 0.03125, %v154_v19 }
  0x16   :  { %v830_v34 = vmul.f32 0.03125, %v155_v20  ;;  %v152_v35 = vcvt.s32.f32 %v79_v25  ;;  %v153_v36 = vcvt.s32.f32 %v80_v26  ;;  %v834_v38 = vadd.s32 128, %v84_v2 }
  0x17   :  { %v609_v32 = vpop.eup %608  ;;  %v836_v39 = vmul.f32 0.03125, %v136_v23  ;;  %v134_v40 = vcvt.s32.f32 %v61_v27  ;;  %v838_v41 = vmul.f32 0.03125, %v137_v24  ;;  %v135_v42 = vcvt.s32.f32 %v62_v30 }
  0x18   :  { %v832_v37 = vadd.f32 1.0, %v609_v32  ;;  %v78_v43 = vadd.s32 216, %v803_v1  ;;  %v59_v44 = vadd.s32 64, %v803_v1  ;;  %v844_v47 = vmul.f32 0.03125, %v152_v35 }
  0x19   :  { %v150_v48 = vcvt.s32.f32 %v826_v31  ;;  %v847_v52 = vmul.f32 0.03125, %v153_v36  ;;  %vm323_vm0 = vcmp.eq.s32.totalorder %v81_v11, %v834_v38  ;;  %vm324_vm1 = vcmp.eq.s32.totalorder %v82_v12, %v834_v38 }
  0x1a   :  { %v611_v45 = vpop.eup %610  ;;  %612 = vrcp.f32 %v832_v37  ;;  %v120_v46 = vand.u32 2147483648, %v832_v37  ;;  %v851_v53 = vmul.f32 0.03125, %v134_v40  ;;  %v118_v55 = vand.u32 2147483647, %v832_v37 }
  0x1b   :  { %v94_v49 = vadd.f32 1.0, %v611_v45  ;;  %v97_v50 = vmul.f32 -0.5, %v611_v45  ;;  %v100_v51 = vand.u32 2147483647, %v611_v45  ;;  %v151_v56 = vcvt.s32.f32 %v78_v43 }
  0x1c   :  { %vm114_vm3 = vweird.f32 %v832_v37  ;;  %v859_v58 = vor.u32 1.1754944e-38, %v120_v46  ;;  %vm321_vm4 = vcmp.eq.s32.totalorder %v79_v25, %v834_v38  ;;  %vm322_vm5 = vcmp.eq.s32.totalorder %v80_v26, %v834_v38 }
  0x1d   :  { %614 = vlog2.f32 %v94_v49  ;;  %v98_v54 = vadd.f32 1.0, %v97_v50  ;;  %vm854_vm2 = vcmp.lt.f32.partialorder %v100_v51, 0.0004427343  ;;  %v864_v61 = vsel %vm323_vm0, 1.0, %v764_v60 }
  0x1e   :  { %v867_v62 = vsel %vm324_vm1, 1.0, %v764_v60  ;;  %v869_v63 = vmul.f32 0.03125, %v135_v42  ;;  %v874_v2 = vsel %vm321_vm4, 1.0, %v764_v60  ;;  %v877_v4 = vsel %vm322_vm5, 1.0, %v764_v60 }
  0x1f   :  { %v99_v59 = vmul.f32 %v611_v45, %v98_v54  ;;  %v60_v5 = vadd.s32 72, %v803_v1  ;;  %v881_v6 = vadd.s32 192, %v803_v1  ;;  %v132_v8 = vcvt.s32.f32 %v59_v44 }
  0x20   :  { %v871_v0 = vpop.eup %612  ;;  %v886_v9 = vadd.s32 200, %v803_v1  ;;  %v57_v10 = vadd.s32 48, %v803_v1  ;;  %v183_v11 = vmul.f32 0.03125, %v150_v48  ;;  %v184_v12 = vmul.f32 0.03125, %v151_v56 }
  0x21   :  { %v110_v7 = vmul.f32 %v871_v0, %v832_v37  ;;  %v133_v13 = vcvt.s32.f32 %v60_v5  ;;  %v58_v14 = vadd.s32 56, %v803_v1  ;;  %v148_v17 = vcvt.s32.f32 %v881_v6 }
  0x22   :  { %v149_v18 = vcvt.s32.f32 %v886_v9  ;;  %v130_v19 = vcvt.s32.f32 %v57_v10  ;;  %vm319_vm6 = vcmp.eq.s32.totalorder %v826_v31, %v834_v38  ;;  %vm320_vm7 = vcmp.eq.s32.totalorder %v78_v43, %v834_v38 }
  0x23   :  { %v615_v15 = vpop.eup %614  ;;  %v111_v16 = vsub.f32 1.0, %v110_v7  ;;  %v896_v23 = vadd.s32 176, %v803_v1  ;;  %vm115_vm8 = vweird.f32 %v871_v0  ;;  %vm900_vm9 = vcmp.eq.f32.partialorder %v118_v55, 8.507059e+37 }
  0x24   :  { %v96_v20 = vmul.f32 0.6931472, %v615_v15  ;;  %v165_v26 = vmul.f32 0.03125, %v132_v8  ;;  %v166_v27 = vmul.f32 0.03125, %v133_v13  ;;  %v907_v31 = vsel %vm319_vm6, 1.0, %v764_v60  ;;  %vm925_vm10 = vmor %vm114_vm3, %vm115_vm8 }
  0x25   :  { %v112_v24 = vmul.f32 %v871_v0, %v111_v16  ;;  %v910_v32 = vsel %vm320_vm7, 1.0, %v764_v60  ;;  %v131_v35 = vcvt.s32.f32 %v58_v14  ;;  %v181_v40 = vmul.f32 0.03125, %v148_v17 }
  0x26   :  { %v102_v30 = vsel %vm854_vm2, %v99_v59, %v96_v20  ;;  %v182_v42 = vmul.f32 0.03125, %v149_v18  ;;  %v163_v43 = vmul.f32 0.03125, %v130_v19  ;;  %v918_v46 = vadd.s32 184, %v803_v1 }
  0x27   :  { %v914_v36 = vadd.f32 %v102_v30, %v89_v21  ;;  %v113_v44 = vadd.f32 %v871_v0, %v112_v24  ;;  %v164_v45 = vmul.f32 0.03125, %v131_v35  ;;  %v146_v48 = vcvt.s32.f32 %v896_v23 }
  0x28   :  { %v935_v51 = vadd.s32 32, %v803_v1  ;;  %v944_v56 = vadd.s32 40, %v803_v1  ;;  %vm317_vm11 = vcmp.eq.s32.totalorder %v881_v6, %v834_v38  ;;  %vm318_vm12 = vcmp.eq.s32.totalorder %v886_v9, %v834_v38 }
  0x29   :  { %v203_v3 = vmul.f32 %v815_v22, %v914_v36  ;;  %v204_v21 = vmul.f32 %v820_v28, %v914_v36  ;;  %v285_v50 = vsub.f32 0.0, %v914_v36  ;;  %v219_v54 = vmul.f32 %v828_v33, %v914_v36 }
  0x2a   :  { %v220_v37 = vmul.f32 %v830_v34, %v914_v36  ;;  %v201_v55 = vmul.f32 %v836_v39, %v914_v36  ;;  %v202_v59 = vmul.f32 %v838_v41, %v914_v36  ;;  %v117_v33 = vsel %vm925_vm10, %v871_v0, %v113_v44 }
  0x2b   :  { %v249_v22 = vmul.f32 1.442695, %v203_v3  ;;  %v251_v57 = vmul.f32 1.442695, %v204_v21  ;;  %v288_v28 = vmul.f32 %v822_v29, %v285_v50  ;;  %v281_v5 = vmul.f32 1.442695, %v219_v54 }
  0x2c   :  { %v217_v34 = vmul.f32 %v844_v47, %v914_v36  ;;  %v955_v39 = vadd.s32 160, %v803_v1  ;;  %v283_v8 = vmul.f32 1.442695, %v220_v37  ;;  %v218_v29 = vmul.f32 %v847_v52, %v914_v36  ;;  %v403_v3 = vld [vmem:[#allocation7 + $0x70] sm:$0xff]  ;;  %v404_v21 = vld [vmem:[#allocation7 + $0x78] sm:$0xff] }
  0x2d   :  { %616 = vpow2.f32 %v249_v22  ;;  %v289_v7 = vmul.f32 1.442695, %v288_v28  ;;  %v245_v10 = vmul.f32 1.442695, %v201_v55  ;;  %v199_v41 = vmul.f32 %v851_v53, %v914_v36  ;;  %v419_v50 = vld [vmem:[#allocation7 + $0xf0] sm:$0xff]  ;;  %v420_v22 = vld [vmem:[#allocation7 + $0xf8] sm:$0xff] }
  0x2e   :  { %618 = vpow2.f32 %v251_v57  ;;  %v200_v0 = vmul.f32 %v869_v63, %v914_v36  ;;  %v247_v13 = vmul.f32 1.442695, %v202_v59  ;;  %v215_v47 = vmul.f32 %v183_v11, %v914_v36 }
  0x2f   :  { %620 = vpow2.f32 %v289_v7  ;;  %v216_v14 = vmul.f32 %v184_v12, %v914_v36  ;;  %v122_v15 = vsel %vm900_vm9, %v859_v58, %v117_v33  ;;  %v277_v52 = vmul.f32 1.442695, %v217_v34  ;;  %v401_v34 = vld [vmem:[#allocation7 + $0x60] sm:$0xff] }
  0x30   :  { %622 = vpow2.f32 %v281_v5  ;;  %v197_v16 = vmul.f32 %v165_v26, %v914_v36  ;;  %v279_v17 = vmul.f32 1.442695, %v218_v29  ;;  %v241_v53 = vmul.f32 1.442695, %v199_v41 }
  0x31   :  { %624 = vpow2.f32 %v283_v8  ;;  %v198_v18 = vmul.f32 %v166_v27, %v914_v36  ;;  %v243_v63 = vmul.f32 1.442695, %v200_v0  ;;  %v213_v19 = vmul.f32 %v181_v40, %v914_v36 }
  0x32   :  { %626 = vpow2.f32 %v245_v10  ;;  %v214_v11 = vmul.f32 %v182_v42, %v914_v36  ;;  %v273_v20 = vmul.f32 1.442695, %v215_v47  ;;  %v275_v24 = vmul.f32 1.442695, %v216_v14  ;;  %v402_v14 = vld [vmem:[#allocation7 + $0x68] sm:$0xff] }
  0x33   :  { %v617_v12 = vpop.eup %616  ;;  %628 = vpow2.f32 %v247_v13  ;;  %v237_v58 = vmul.f32 1.442695, %v197_v16  ;;  %v972_v30 = vmul.f32 1.442695, %v198_v18  ;;  %v974_v26 = vmul.f32 1.442695, %v213_v19 }
  0x34   :  { %v619_v25 = vpop.eup %618  ;;  %630 = vpow2.f32 %v277_v52  ;;  %v978_v35 = vmul.f32 1.442695, %v214_v11  ;;  %v195_v40 = vmul.f32 %v163_v43, %v914_v36  ;;  %v196_v42 = vmul.f32 %v164_v45, %v914_v36 }
  0x35   :  { %v621_v27 = vpop.eup %620  ;;  %632 = vpow2.f32 %v279_v17  ;;  %v147_v54 = vcvt.s32.f32 %v918_v46  ;;  %v179_v37 = vmul.f32 0.03125, %v146_v48  ;;  %v993_v43 = vsel %vm317_vm11, 1.0, %v764_v60 }
  0x36   :  { %v623_v44 = vpop.eup %622  ;;  %v982_v49 = vmul.f32 %v621_v27, %v122_v15  ;;  %634 = vpow2.f32 %v241_v53  ;;  %v233_v45 = vmul.f32 1.442695, %v195_v40  ;;  %v995_v57 = vmul.f32 1.442695, %v196_v42  ;;  %v417_v15 = vld [vmem:[#allocation7 + $0xe0] sm:$0xff]  ;;  %v418_v53 = vld [vmem:[#allocation7 + $0xe8] sm:$0xff] }
  0x37   :  { %v625_v55 = vpop.eup %624  ;;  %636 = vpow2.f32 %v243_v63  ;;  %vm315_vm13 = vcmp.eq.s32.totalorder %v896_v23, %v834_v38  ;;  %v180_v8 = vmul.f32 0.03125, %v147_v54  ;;  %v211_v29 = vmul.f32 %v179_v37, %v914_v36 }
  0x38   :  { %v627_v28 = vpop.eup %626  ;;  %v435_v59 = vmul.f32 %v617_v12, %v982_v49  ;;  %v436_v33 = vmul.f32 %v619_v25, %v982_v49  ;;  %v451_v5 = vmul.f32 %v623_v44, %v982_v49  ;;  %v452_v48 = vmul.f32 %v625_v55, %v982_v49  ;;  %v399_v25 = vld [vmem:[#allocation7 + $0x50] sm:$0xff]  ;;  %v400_v44 = vld [vmem:[#allocation7 + $0x58] sm:$0xff] }
  0x39   :  { %v629_v7 = vpop.eup %628  ;;  %v433_v6 = vmul.f32 %v627_v28, %v982_v49  ;;  %638 = vpow2.f32 %v273_v20  ;;  %v415_v55 = vld [vmem:[#allocation7 + $0xd0] sm:$0xff]  ;;  %vm316_vm14 = vcmp.eq.s32.totalorder %v918_v46, %v834_v38  ;;  %v1031_v9 = vsel %vm315_vm13, 1.0, %v764_v60 }
  0x3a   :  { %v631_v10 = vpop.eup %630  ;;  %v467_v41 = vmul.f32 %v435_v59, %v403_v3  ;;  %v468_v0 = vmul.f32 %v436_v33, %v404_v21  ;;  %v483_v13 = vmul.f32 %v451_v5, %v419_v50  ;;  %v484_v47 = vmul.f32 %v452_v48, %v420_v22  ;;  %v416_v33 = vld [vmem:[#allocation7 + $0xd8] sm:$0xff] }
  0x3b   :  { %v633_v52 = vpop.eup %632  ;;  %v434_v16 = vmul.f32 %v629_v7, %v982_v49  ;;  %v465_v17 = vmul.f32 %v433_v6, %v401_v34  ;;  %v449_v18 = vmul.f32 %v631_v10, %v982_v49  ;;  %640 = vpow2.f32 %v275_v24  ;;  %v397_v6 = vld [vmem:[#allocation7 + $0x40] sm:$0xff]  ;;  %v398_v10 = vld [vmem:[#allocation7 + $0x48] sm:$0xff] }
  0x3c   :  { %v635_v63 = vpop.eup %634  ;;  %v525_v19 = vpack.c.bf16 %v468_v0, %v467_v41  ;;  %v515_v11 = vadd.f32 %v864_v61, %v483_v13  ;;  %v516_v12 = vadd.f32 %v867_v62, %v484_v47  ;;  %v450_v20 = vmul.f32 %v633_v52, %v982_v49  ;;  %v413_v13 = vld [vmem:[#allocation7 + $0xc0] sm:$0xff] }
  0x3d   :  { %v637_v27 = vpop.eup %636  ;;  %v466_v40 = vmul.f32 %v434_v16, %v402_v14  ;;  %v481_v42 = vmul.f32 %v449_v18, %v417_v15  ;;  %v431_v3 = vmul.f32 %v635_v63, %v982_v49  ;;  %642 = vpow2.f32 %v237_v58  ;;  %v414_v16 = vld [vmem:[#allocation7 + $0xc8] sm:$0xff] }
  0x3e   :  { %541 = vmatpush.bf16.msra.mxu0 %v525_v19  ;;  %v533_v21 = vpack.c.bf16 %v516_v12, %v515_v11  ;;  %v482_v50 = vmul.f32 %v450_v20, %v418_v53  ;;  %v432_v24 = vmul.f32 %v637_v27, %v982_v49  ;;  %644 = vpow2.f32 %v972_v30  ;;  %v395_v19 = vld [vmem:[#allocation7 + $0x30] sm:$0xff] }
  0x3f   :  { %v639_v61 = vpop.eup %638  ;;  %v524_v54 = vpack.c.bf16 %v466_v40, %v465_v17  ;;  %v513_v62 = vadd.f32 %v874_v2, %v481_v42  ;;  %v463_v37 = vmul.f32 %v431_v3, %v399_v25  ;;  %646 = vpow2.f32 %v974_v26  ;;  %v396_v42 = vld [vmem:[#allocation7 + $0x38] sm:$0xff] }
  0x40   :  { %554 = vmatpush.bf16.msra.mxu1 %v533_v21  ;;  %v514_v22 = vadd.f32 %v877_v4, %v482_v50  ;;  %v464_v28 = vmul.f32 %v432_v24, %v400_v44  ;;  %v447_v58 = vmul.f32 %v639_v61, %v982_v49  ;;  %648 = vpow2.f32 %v978_v35 }
  0x41   :  { %v641_v59 = vpop.eup %640  ;;  %v595_v30 = vsel %vm318_vm12, 1.0, %v764_v60  ;;  %650 = vpow2.f32 %v233_v45  ;;  %v212_v2 = vmul.f32 %v180_v8, %v914_v36  ;;  %v265_v5 = vmul.f32 1.442695, %v211_v29 }
  0x42   :  { %542 = vmatpush.bf16.msra.mxu0 %v524_v54  ;;  %v532_v26 = vpack.c.bf16 %v514_v22, %v513_v62  ;;  %v523_v48 = vpack.c.bf16 %v464_v28, %v463_v37  ;;  %v448_v4 = vmul.f32 %v641_v59, %v982_v49  ;;  %v479_v34 = vmul.f32 %v447_v58, %v415_v55  ;;  %v411_v54 = vld [vmem:[#allocation7 + $0xb0] sm:$0xff]  ;;  %v412_v22 = vld [vmem:[#allocation7 + $0xb8] sm:$0xff] }
  0x43   :  { %v643_v7 = vpop.eup %642  ;;  %652 = vpow2.f32 %v995_v57  ;;  %v267_v35 = vmul.f32 1.442695, %v212_v2  ;;  %v128_v47 = vcvt.s32.f32 %v935_v51  ;;  %v129_v23 = vcvt.s32.f32 %v944_v56 }
  0x44   :  { %v645_v45 = vpop.eup %644  ;;  %555 = vmatpush.bf16.msra.mxu1 %v532_v26  ;;  %v480_v8 = vmul.f32 %v448_v4, %v416_v33  ;;  %v511_v29 = vadd.f32 %v907_v31, %v479_v34  ;;  %v429_v41 = vmul.f32 %v643_v7, %v982_v49  ;;  %654 = vpow2.f32 %v265_v5 }
  0x45   :  { %v647_v57 = vpop.eup %646  ;;  %v430_v0 = vmul.f32 %v645_v45, %v982_v49  ;;  %656 = vpow2.f32 %v267_v35  ;;  %v1041_v17 = vadd.s32 168, %v803_v1  ;;  %v161_v11 = vmul.f32 0.03125, %v128_v47  ;;  %v393_v47 = vld [vmem:[#allocation7 + $0x20] sm:$0xff] }
  0x46   :  { %v649_v14 = vpop.eup %648  ;;  %543 = vmatpush.bf16.msra.mxu0 %v523_v48  ;;  %v512_v15 = vadd.f32 %v910_v32, %v480_v8  ;;  %v461_v52 = vmul.f32 %v429_v41, %v397_v6  ;;  %v445_v31 = vmul.f32 %v647_v57, %v982_v49  ;;  %v162_v51 = vmul.f32 0.03125, %v129_v23 }
  0x47   :  { %v651_v53 = vpop.eup %650  ;;  %v462_v18 = vmul.f32 %v430_v0, %v398_v10  ;;  %v446_v63 = vmul.f32 %v649_v14, %v982_v49  ;;  %v144_v32 = vcvt.s32.f32 %v955_v39  ;;  %v193_v44 = vmul.f32 %v161_v11, %v914_v36 }
  0x48   :  { %v531_v12 = vpack.c.bf16 %v512_v15, %v511_v29  ;;  %v477_v56 = vmul.f32 %v445_v31, %v413_v13  ;;  %v427_v20 = vmul.f32 %v651_v53, %v982_v49  ;;  %v194_v3 = vmul.f32 %v162_v51, %v914_v36 }
  0x49   :  { %v653_v25 = vpop.eup %652  ;;  %v522_v27 = vpack.c.bf16 %v462_v18, %v461_v52  ;;  %v478_v40 = vmul.f32 %v446_v63, %v414_v16  ;;  %v145_v62 = vcvt.s32.f32 %v1041_v17  ;;  %v229_v58 = vmul.f32 1.442695, %v193_v44  ;;  %v394_v16 = vld [vmem:[#allocation7 + $0x28] sm:$0xff] }
  0x4a   :  { %v655_v21 = vpop.eup %654  ;;  %556 = vmatpush.bf16.msra.mxu1 %v531_v12  ;;  %v509_v50 = vadd.f32 %v993_v43, %v477_v56  ;;  %v428_v24 = vmul.f32 %v653_v25, %v982_v49  ;;  %v459_v61 = vmul.f32 %v427_v20, %v395_v19  ;;  %v231_v59 = vmul.f32 1.442695, %v194_v3  ;;  %v409_v3 = vld [vmem:[#allocation7 + $0xa0] sm:$0xff] }
  0x4b   :  { %v657_v37 = vpop.eup %656  ;;  %544 = vmatpush.bf16.msra.mxu0 %v522_v27  ;;  %v510_v55 = vadd.f32 %v595_v30, %v478_v40  ;;  %v443_v28 = vmul.f32 %v655_v21, %v982_v49  ;;  %v177_v5 = vmul.f32 0.03125, %v144_v32  ;;  %v178_v26 = vmul.f32 0.03125, %v145_v62 }
  0x4c   :  { %v460_v33 = vmul.f32 %v428_v24, %v396_v42  ;;  %v444_v2 = vmul.f32 %v657_v37, %v982_v49  ;;  %v593_v48 = vsel %vm316_vm14, 1.0, %v764_v60  ;;  %658 = vpow2.f32 %v229_v58 }
  0x4d   :  { %v530_v43 = vpack.c.bf16 %v510_v55, %v509_v50  ;;  %v475_v4 = vmul.f32 %v443_v28, %v411_v54  ;;  %660 = vpow2.f32 %v231_v59  ;;  %v209_v7 = vmul.f32 %v177_v5, %v914_v36  ;;  %v410_v54 = vld [vmem:[#allocation7 + $0xa8] sm:$0xff] }
  0x4e   :  { %v521_v34 = vpack.c.bf16 %v460_v33, %v459_v61  ;;  %v476_v30 = vmul.f32 %v444_v2, %v412_v22  ;;  %v210_v35 = vmul.f32 %v178_v26, %v914_v36  ;;  %vm313_vm15 = vcmp.eq.s32.totalorder %v955_v39, %v834_v38 }
  0x4f   :  { %557 = vmatpush.bf16.msra.mxu1 %v530_v43  ;;  %v507_v6 = vadd.f32 %v1031_v9, %v475_v4  ;;  %v261_v8 = vmul.f32 1.442695, %v209_v7  ;;  %v53_v46 = vadd.s32 16, %v803_v1  ;;  %v54_v10 = vadd.s32 24, %v803_v1 }
  0x50   :  { %545 = vmatpush.bf16.msra.mxu0 %v521_v34  ;;  %v508_v45 = vadd.f32 %v593_v48, %v476_v30  ;;  %v263_v29 = vmul.f32 1.442695, %v210_v35  ;;  %v1065_v41 = vadd.s32 144, %v803_v1  ;;  %v1068_v57 = vadd.s32 152, %v803_v1 }
  0x51   :  { %662 = vpow2.f32 %v261_v8  ;;  %vm314_vm0 = vcmp.eq.s32.totalorder %v1041_v17, %v834_v38  ;;  %v126_v0 = vcvt.s32.f32 %v53_v46  ;;  %v127_v23 = vcvt.s32.f32 %v54_v10  ;;  %v391_v46 = vld [vmem:[#allocation7 + $0x10] sm:$0xff] }
  0x52   :  { %v529_v9 = vpack.c.bf16 %v508_v45, %v507_v6  ;;  %v659_v13 = vpop.eup %658  ;;  %664 = vpow2.f32 %v263_v29  ;;  %v142_v14 = vcvt.s32.f32 %v1065_v41  ;;  %v143_v15 = vcvt.s32.f32 %v1068_v57 }
  0x53   :  { %v661_v52 = vpop.eup %660  ;;  %v425_v31 = vmul.f32 %v659_v13, %v982_v49  ;;  %v159_v53 = vmul.f32 0.03125, %v126_v0  ;;  %v52_v18 = vadd.s32 8, %v803_v1  ;;  %v160_v19 = vmul.f32 0.03125, %v127_v23 }
  0x54   :  { %558 = vmatpush.bf16.msra.mxu1 %v529_v9  ;;  %v426_v63 = vmul.f32 %v661_v52, %v982_v49  ;;  %v175_v11 = vmul.f32 0.03125, %v142_v14  ;;  %v176_v51 = vmul.f32 0.03125, %v143_v15  ;;  %v590_v56 = vsel %vm313_vm15, 1.0, %v764_v60  ;;  %v392_v9 = vld [vmem:[#allocation7 + $0x18] sm:$0xff]  ;;  %v407_v14 = vld [vmem:[#allocation7 + $0x90] sm:$0xff] }
  0x55   :  { %v457_v12 = vmul.f32 %v425_v31, %v393_v47  ;;  %v591_v20 = vsel %vm314_vm0, 1.0, %v764_v60  ;;  %v191_v32 = vmul.f32 %v159_v53, %v914_v36  ;;  %v192_v27 = vmul.f32 %v160_v19, %v914_v36  ;;  %v408_v31 = vld [vmem:[#allocation7 + $0x98] sm:$0xff] }
  0x56   :  { %v458_v25 = vmul.f32 %v426_v63, %v394_v16  ;;  %v207_v40 = vmul.f32 %v175_v11, %v914_v36  ;;  %v208_v42 = vmul.f32 %v176_v51, %v914_v36  ;;  %v124_v39 = vcvt.s32.f32 %v803_v1 }
  0x57   :  { %v663_v44 = vpop.eup %662  ;;  %v225_v21 = vmul.f32 1.442695, %v191_v32  ;;  %v125_v50 = vcvt.s32.f32 %v52_v18  ;;  %v1091_v24 = vadd.s32 128, %v803_v1  ;;  %v227_v37 = vmul.f32 1.442695, %v192_v27  ;;  %v390_v27 = vld [vmem:[#allocation7 + $0x8] sm:$0xff] }
  0x58   :  { %v665_v17 = vpop.eup %664  ;;  %v520_v61 = vpack.c.bf16 %v458_v25, %v457_v12  ;;  %v441_v62 = vmul.f32 %v663_v44, %v982_v49  ;;  %v257_v55 = vmul.f32 1.442695, %v207_v40  ;;  %v259_v28 = vmul.f32 1.442695, %v208_v42 }
  0x59   :  { %v442_v22 = vmul.f32 %v665_v17, %v982_v49  ;;  %666 = vpow2.f32 %v225_v21  ;;  %v157_v58 = vmul.f32 0.03125, %v124_v39  ;;  %v158_v33 = vmul.f32 0.03125, %v125_v50 }
  0x5a   :  { %546 = vmatpush.bf16.msra.mxu0 %v520_v61  ;;  %v473_v59 = vmul.f32 %v441_v62, %v409_v3  ;;  %668 = vpow2.f32 %v227_v37  ;;  %v1096_v2 = vadd.s32 136, %v803_v1  ;;  %v140_v43 = vcvt.s32.f32 %v1091_v24  ;;  %v405_v61 = vld [vmem:[#allocation7 + $0x80] sm:$0xff]  ;;  %v406_v62 = vld [vmem:[#allocation7 + $0x88] sm:$0xff] }
  0x5b   :  { %v474_v5 = vmul.f32 %v442_v22, %v410_v54  ;;  %670 = vpow2.f32 %v257_v55  ;;  %v189_v26 = vmul.f32 %v157_v58, %v914_v36  ;;  %v190_v4 = vmul.f32 %v158_v33, %v914_v36 }
  0x5c   :  { %v505_v48 = vadd.f32 %v590_v56, %v473_v59  ;;  %672 = vpow2.f32 %v259_v28  ;;  %v141_v34 = vcvt.s32.f32 %v1096_v2  ;;  %v173_v6 = vmul.f32 0.03125, %v140_v43  ;;  %v389_v56 = vld [vmem:[#allocation7] sm:$0xff] }
  0x5d   :  { %v506_v30 = vadd.f32 %v591_v20, %v474_v5  ;;  %v221_v7 = vmul.f32 1.442695, %v189_v26  ;;  %v223_v35 = vmul.f32 1.442695, %v190_v4  ;;  %vm311_vm1 = vcmp.eq.s32.totalorder %v1065_v41, %v834_v38  ;;  %v517_v20 = vld [vmem:[#allocation4] sm:$0xff] }
  0x5e   :  { %v174_v45 = vmul.f32 0.03125, %v141_v34  ;;  %v205_v29 = vmul.f32 %v173_v6, %v914_v36  ;;  %vm312_vm2 = vcmp.eq.s32.totalorder %v1068_v57, %v834_v38  ;;  %v588_v41 = vsel %vm311_vm1, 1.0, %v764_v60 }
  0x5f   :  { %v667_v8 = vpop.eup %666  ;;  %v528_v1 = vpack.c.bf16 %v506_v30, %v505_v48  ;;  %674 = vpow2.f32 %v221_v7  ;;  %v589_v19 = vsel %vm312_vm2, 1.0, %v764_v60  ;;  %vm309_vm3 = vcmp.eq.s32.totalorder %v1091_v24, %v834_v38 }
  0x60   :  { %v669_v10 = vpop.eup %668  ;;  %v423_v0 = vmul.f32 %v667_v8, %v982_v49  ;;  %676 = vpow2.f32 %v223_v35  ;;  %v206_v13 = vmul.f32 %v174_v45, %v914_v36  ;;  %v253_v15 = vmul.f32 1.442695, %v205_v29 }
  0x61   :  { %v671_v47 = vpop.eup %670  ;;  %559 = vmatpush.bf16.msra.mxu1 %v528_v1  ;;  %v424_v23 = vmul.f32 %v669_v10, %v982_v49  ;;  %v535_v21 = vunpack.c.l.b16 %v517_v20  ;;  %vm310_vm4 = vcmp.eq.s32.totalorder %v1096_v2, %v834_v38  ;;  %v586_v22 = vsel %vm309_vm3, 1.0, %v764_v60 }
  0x62   :  { %v673_v52 = vpop.eup %672  ;;  %v455_v16 = vmul.f32 %v423_v0, %v391_v46  ;;  %v439_v53 = vmul.f32 %v671_v47, %v982_v49  ;;  %v255_v18 = vmul.f32 1.442695, %v206_v13  ;;  %678 = vpow2.f32 %v253_v15 }
  0x63   :  { %v456_v63 = vmul.f32 %v424_v23, %v392_v9  ;;  %v440_v36 = vmul.f32 %v673_v52, %v982_v49  ;;  %v587_v24 = vsel %vm310_vm4, 1.0, %v764_v60  ;;  %v537_v59 = vpack.c.b16 %v535_v21, %v535_v21 }
  0x64   :  { %v471_v11 = vmul.f32 %v439_v53, %v407_v14  ;;  %680 = vpow2.f32 %v255_v18  ;;  %v536_v26 = vunpack.c.h.b16 %v517_v20 }
  0x65   :  { %v675_v51 = vpop.eup %674  ;;  %v519_v57 = vpack.c.bf16 %v456_v63, %v455_v16  ;;  %v472_v12 = vmul.f32 %v440_v36, %v408_v31 }
  0x66   :  { %v677_v32 = vpop.eup %676  ;;  %v503_v25 = vadd.f32 %v588_v41, %v471_v11  ;;  %v421_v40 = vmul.f32 %v675_v51, %v982_v49  ;;  %v538_v43 = vpack.c.b16 %v536_v26, %v536_v26 }
  0x67   :  { %547 = vmatpush.bf16.msra.mxu0 %v519_v57  ;;  %v504_v42 = vadd.f32 %v589_v19, %v472_v12  ;;  %v422_v44 = vmul.f32 %v677_v32, %v982_v49 }
  0x68   :  { %v453_v3 = vmul.f32 %v421_v40, %v389_v56  ;;  %v679_v39 = vpop.eup %678 }
  0x69   :  { %v527_v50 = vpack.c.bf16 %v504_v42, %v503_v25  ;;  %v454_v17 = vmul.f32 %v422_v44, %v390_v27  ;;  %v437_v37 = vmul.f32 %v679_v39, %v982_v49 }
  0x6a   :  { %v681_v54 = vpop.eup %680 }
  0x6b   :  { %560 = vmatpush.bf16.msra.mxu1 %v527_v50  ;;  %v518_v55 = vpack.c.bf16 %v454_v17, %v453_v3  ;;  %v438_v28 = vmul.f32 %v681_v54, %v982_v49  ;;  %v469_v58 = vmul.f32 %v437_v37, %v405_v61 }
  0x6d   :  { %548 = vmatpush.bf16.msra.mxu0 %v518_v55  ;;  %v470_v33 = vmul.f32 %v438_v28, %v406_v62  ;;  %v501_v5 = vadd.f32 %v586_v22, %v469_v58 }
  0x6f   :  { %v502_v38 = vadd.f32 %v587_v24, %v470_v33 }
  0x70   :  { %549 = vmatmul.bf16.vlgmr.msra.gmra.mxu0 %v537_v59 }
  0x71   :  { %v526_v2 = vpack.c.bf16 %v502_v38, %v501_v5 }
  0x73   :  { %561 = vmatpush.bf16.msra.mxu1 %v526_v2 }
  0x76   :  { %562 = vmatmul.bf16.vlgmr.msra.gmra.mxu1 %v538_v43 }
  0xed   :  { %v550_v48 = vpop.f32.mrf.mxu0 }
  0xf3   :  { %v563_v60 = vpop.f32.mrf.mxu1 }
  0xf4   :  { %v564_v49 = vadd.f32 %v563_v60, %v550_v48 }
  0xf5   :  { %v552_v4 = vpop.f32.mrf.mxu0 }
  0xf6   :  { %567 = vst [vmem:[#allocation9] sm:$0xff] %v564_v49 }
  0xf7   :  { %578 = dma.vmem_to_hbm [thread:$0]  %s574_s3, 128, %s576_s7, [#allocation6]  }
  0xfb   :  { %v565_v34 = vpop.f32.mrf.mxu1 }
  0xfc   :  { %758 = dma.done.wait [#allocation6], 128  }
  0xfd   :  { %759 = vsyncadd [#allocation6], 4294967168 }
  0xfe   :  { %583 = vsyncpa [#allocation5], 1 }
  0xff   :  { %584 = vsyncpa [#allocation8], 1 }
 0x100   :  { %585 = vsyncpa [#allocation6], 1 }

</bundles_post_ra>
